<compile_context>
chip_gen: v6e
topology: v6e:2x2x1
jax: 0.10.0
libtpu: 0.0.40
codegen_flags: <defaults>
</compile_context>

<pallas_src>
import math

import jax
import jax.numpy as jnp
from jax.experimental import pallas as pl
from jax.experimental.pallas import tpu as pltpu


def _round_up(a, b):
    return ((a + b - 1) // b) * b


def _gating_kernel(x_ref, w1_ref, b1_ref, w2_ref, b2_ref, o_ref):
    # x:  (TM, D)       w1: (D, mid)    b1: (1, mid)   [weights in activation dtype]
    # w2: (mid, out)    b2: (1, out)    o:  (TM, out)
    h = jnp.dot(x_ref[...], w1_ref[...], preferred_element_type=jnp.float32)
    h = jnp.maximum(h + b1_ref[...].astype(jnp.float32), 0.0)
    # Keep layer 2 on the native-dtype MXU path (bf16 x bf16 when the inputs
    # are bf16); accumulation stays f32.
    y = jnp.dot(h.astype(w2_ref.dtype), w2_ref[...],
                preferred_element_type=jnp.float32)
    y = y + b2_ref[...].astype(jnp.float32)
    o_ref[...] = jax.nn.sigmoid(y).astype(o_ref.dtype)


def _pick_tile_and_vmem(m, d, mid, out_feats, act_bytes, tm_req):
    """Pick the token tile (rows per grid step) and a VMEM budget for Mosaic."""
    try:
        vmem_cap = int(pltpu.get_tpu_info().vmem_capacity_bytes)
    except Exception:
        vmem_cap = 64 * 1024 * 1024  # conservative fallback (v7x per-TC)

    # ~70% of physical VMEM, capped at 96 MiB: stays inside v7x's 64 MiB/TC
    # while letting v6e/v5e grow well past their 32/16 MiB scoped defaults.
    budget = min((vmem_cap * 7) // 10, 96 * 1024 * 1024)

    # Weights/biases use constant index_maps but are still double-buffered.
    fixed = 2 * (d * mid + mid * out_feats) * act_bytes + 2 * (mid + out_feats) * 4
    # Per token row: double-buffered x row + f32 hidden row + double-buffered out row.
    per_row = 2 * d * act_bytes + mid * 4 + 2 * out_feats * act_bytes

    avail = max(budget - fixed, 512 * 1024)
    tm_cap = max(128, (avail // per_row) // 128 * 128)

    tm = 2048 if tm_req is None else int(tm_req)
    tm = min(tm, tm_cap, 4096)
    tm = _round_up(max(tm, 128), 128)
    tm = min(tm, _round_up(m, 128))

    # v7x dual-TC: the grid axis is the only cross-TC parallelism; keep >= 2
    # grid steps whenever there are enough tokens to split.
    if m > 256 and -(-m // tm) < 2:
        tm = max(128, _round_up(-(-m // 2), 128))

    vmem_limit = int(fixed + tm * per_row + (4 << 20))  # headroom for Mosaic scratch
    vmem_limit = max(16 << 20, min(vmem_limit, vmem_cap))
    return tm, vmem_limit


def domain_gating_forward(x, w1, b1, w2, b2, *, tm=None, use_pallas=None):
    """x: [..., dec_hid_dim] -> [..., out_feats]

    w1: (dec_hid_dim, mid_dim)   -- already transposed vs. torch's (mid, dec)
    b1: (mid_dim,)
    w2: (mid_dim, out_feats)
    b2: (out_feats,)
    """
    orig_shape = x.shape
    d = orig_shape[-1]
    x2d = x.reshape(-1, d)
    m = x2d.shape[0]
    mid = w1.shape[1]
    out_feats = w2.shape[1]
    act_bytes = jnp.dtype(x.dtype).itemsize

    # Small-problem bypass: pallas_call launch overhead dominates tiny inputs.
    if use_pallas is None:
        use_pallas = m * d * act_bytes >= (1 << 20)
    if not use_pallas:
        h = jnp.maximum(x2d.astype(jnp.float32) @ w1.astype(jnp.float32)
                        + b1.astype(jnp.float32), 0.0)
        y = jax.nn.sigmoid(h @ w2.astype(jnp.float32) + b2.astype(jnp.float32))
        return y.astype(x.dtype).reshape(*orig_shape[:-1], out_feats)

    # Weights in the activation dtype (native bf16 MXU path, half the weight
    # DMA/VMEM when x is bf16).  Biases stay f32: tiny, and the add is exact.
    w1c = w1.astype(x.dtype)
    w2c = w2.astype(x.dtype)
    b1_2d = b1.astype(jnp.float32).reshape(1, mid)
    b2_2d = b2.astype(jnp.float32).reshape(1, out_feats)

    tm, vmem_limit = _pick_tile_and_vmem(m, d, mid, out_feats, act_bytes, tm)
    num_tiles = pl.cdiv(m, tm)  # ragged last block handled by Pallas (no pad copy)

    cost = pl.CostEstimate(
        flops=2 * m * d * mid + 2 * m * mid * out_feats,
        transcendentals=m * out_feats,
        bytes_accessed=(m * d + m * out_feats) * act_bytes
        + (d * mid + mid * out_feats) * act_bytes + (mid + out_feats) * 4,
    )

    out = pl.pallas_call(
        _gating_kernel,
        out_shape=jax.ShapeDtypeStruct((m, out_feats), x.dtype),
        grid_spec=pltpu.PrefetchScalarGridSpec(
            num_scalar_prefetch=0,
            grid=(num_tiles,),
            in_specs=[
                pl.BlockSpec((tm, d), lambda i: (i, 0)),
                pl.BlockSpec((d, mid), lambda i: (0, 0)),
                pl.BlockSpec((1, mid), lambda i: (0, 0)),
                pl.BlockSpec((mid, out_feats), lambda i: (0, 0)),
                pl.BlockSpec((1, out_feats), lambda i: (0, 0)),
            ],
            out_specs=pl.BlockSpec((tm, out_feats), lambda i: (i, 0)),
        ),
        compiler_params=pltpu.CompilerParams(
            dimension_semantics=("parallel",),
            vmem_limit_bytes=vmem_limit,
        ),
        cost_estimate=cost,
    )(x2d, w1c, b1_2d, w2c, b2_2d)
    return out.reshape(*orig_shape[:-1], out_feats)


def _xavier_uniform(key, fan_out, fan_in, dtype=jnp.float32):
    # matches torch.nn.init.xavier_uniform_ on a (fan_out, fan_in) weight
    bound = math.sqrt(6.0 / (fan_in + fan_out))
    return jax.random.uniform(key, (fan_out, fan_in), dtype=dtype,
                              minval=-bound, maxval=bound)


def init_domain_gating_params(key, dec_hid_dim, mid_dim, out_feats=1):
    k1, k2 = jax.random.split(key)
    w1_torch = _xavier_uniform(k1, mid_dim, dec_hid_dim)   # torch (mid, dec) layout
    w2_torch = _xavier_uniform(k2, out_feats, mid_dim)      # torch (out, mid) layout
    b1 = jnp.zeros((mid_dim,), jnp.float32)
    b2 = jnp.zeros((out_feats,), jnp.float32)
    # kernel expects (in, out) layout so the matmul is x @ W
    return w1_torch.T, b1, w2_torch.T, b2


def _reference(x, w1, b1, w2, b2):
    x32 = x.astype(jnp.float32).reshape(-1, x.shape[-1])
    h = jnp.maximum(x32 @ w1.astype(jnp.float32) + b1.astype(jnp.float32), 0.0)
    y = jax.nn.sigmoid(h @ w2.astype(jnp.float32) + b2.astype(jnp.float32))
    return y.reshape(*x.shape[:-1], w2.shape[1])


if __name__ == "__main__":
    key = jax.random.PRNGKey(0)
    k_x, k_p = jax.random.split(key)

    batch, seq, dec_hid_dim, mid_dim, out_feats = 2, 8, 32, 16, 1

    x = jax.random.normal(k_x, (batch, seq, dec_hid_dim), dtype=jnp.float32)
    w1, b1, w2, b2 = init_domain_gating_params(k_p, dec_hid_dim, mid_dim, out_feats)

    # --- out_feats == 1, forced through the Pallas kernel (f32 path) ---
    y = domain_gating_forward(x, w1, b1, w2, b2, use_pallas=True)
    jax.block_until_ready(y)
    ref = _reference(x, w1, b1, w2, b2)
    assert y.shape == (batch, seq, out_feats)
    assert jnp.allclose(y, ref, atol=1e-5, rtol=1e-5)

    # --- out_feats > 1, Pallas kernel ---
    of2 = 4
    w1b, b1b, w2b, b2b = init_domain_gating_params(k_p, dec_hid_dim, mid_dim, of2)
    y2 = domain_gating_forward(x, w1b, b1b, w2b, b2b, use_pallas=True)
    jax.block_until_ready(y2)
    ref2 = _reference(x, w1b, b1b, w2b, b2b)
    assert y2.shape == (batch, seq, of2)
    assert jnp.allclose(y2, ref2, atol=1e-5, rtol=1e-5)

    # --- bf16 activations: native-dtype MXU path (weights cast in wrapper) ---
    xb = x.astype(jnp.bfloat16)
    yb = domain_gating_forward(xb, w1, b1, w2, b2, use_pallas=True)
    jax.block_until_ready(yb)
    refb = _reference(xb, w1, b1, w2, b2)
    assert yb.shape == (batch, seq, out_feats)
    assert jnp.allclose(yb.astype(jnp.float32), refb, atol=5e-2)

    # --- small-problem auto-bypass (plain jnp path) ---
    y_auto = domain_gating_forward(x, w1, b1, w2, b2)
    jax.block_until_ready(y_auto)
    assert jnp.allclose(y_auto, ref, atol=1e-5, rtol=1e-5)

    print("KERNEL_OK")
</pallas_src>

<mosaic_0001>
module attributes {stable_mosaic.version = 11 : i64} {
  func.func @_gating_kernel(%arg0: i32, %arg1: memref<128x32xf32, #tpu.memory_space<vmem>>, %arg2: memref<32x16xf32, #tpu.memory_space<vmem>>, %arg3: memref<1x16xf32, #tpu.memory_space<vmem>>, %arg4: memref<16x1xf32, #tpu.memory_space<vmem>>, %arg5: memref<1x1xf32, #tpu.memory_space<vmem>>, %arg6: memref<128x1xf32, #tpu.memory_space<vmem>>) attributes {dimension_semantics = [#tpu.dimension_semantics<parallel>], iteration_bounds = array<i64: 1>, scalar_prefetch = 0 : i64, scratch_operands = 0 : i64, tpu.core_type = #tpu.core_type<tc>, window_params = [{transform_indices = @transform_0, window_bounds = array<i64: 128, 32>}, {pipeline_mode = #tpu.pipeline_mode<synchronous>, transform_indices = @transform_1, window_bounds = array<i64: 32, 16>}, {pipeline_mode = #tpu.pipeline_mode<synchronous>, transform_indices = @transform_2, window_bounds = array<i64: 1, 16>}, {pipeline_mode = #tpu.pipeline_mode<synchronous>, transform_indices = @transform_3, window_bounds = array<i64: 16, 1>}, {pipeline_mode = #tpu.pipeline_mode<synchronous>, transform_indices = @transform_4, window_bounds = array<i64: 1, 1>}, {transform_indices = @transform_5, window_bounds = array<i64: 128, 1>}]} {
    %c0 = arith.constant 0 : index
    %c0_0 = arith.constant 0 : index
    %0 = vector.load %arg1[%c0, %c0_0] : memref<128x32xf32, #tpu.memory_space<vmem>>, vector<128x32xf32>
    %c0_1 = arith.constant 0 : index
    %c0_2 = arith.constant 0 : index
    %1 = vector.load %arg2[%c0_1, %c0_2] : memref<32x16xf32, #tpu.memory_space<vmem>>, vector<32x16xf32>
    %cst = arith.constant dense<0.000000e+00> : vector<128x16xf32>
    %2 = tpu.matmul %0, %1, %cst {dimension_numbers = #tpu.dot_dimension_numbers<[1], [0], [0], [1], [0, 0, 1, 1], [], []>} : vector<128x32xf32>, vector<32x16xf32>, vector<128x16xf32> -> vector<128x16xf32>
    %c0_3 = arith.constant 0 : index
    %c0_4 = arith.constant 0 : index
    %3 = vector.load %arg3[%c0_3, %c0_4] : memref<1x16xf32, #tpu.memory_space<vmem>>, vector<1x16xf32>
    %4 = vector.broadcast %3 : vector<1x16xf32> to vector<128x16xf32>
    %5 = arith.addf %2, %4 : vector<128x16xf32>
    %cst_5 = arith.constant 0.000000e+00 : f32
    %6 = vector.broadcast %cst_5 : f32 to vector<128x16xf32>
    %7 = arith.maximumf %5, %6 : vector<128x16xf32>
    %c0_6 = arith.constant 0 : index
    %c0_7 = arith.constant 0 : index
    %8 = vector.load %arg4[%c0_6, %c0_7] : memref<16x1xf32, #tpu.memory_space<vmem>>, vector<16x1xf32>
    %cst_8 = arith.constant dense<0.000000e+00> : vector<128x1xf32>
    %9 = tpu.matmul %7, %8, %cst_8 {dimension_numbers = #tpu.dot_dimension_numbers<[1], [0], [0], [1], [0, 0, 1, 1], [], []>} : vector<128x16xf32>, vector<16x1xf32>, vector<128x1xf32> -> vector<128x1xf32>
    %c0_9 = arith.constant 0 : index
    %c0_10 = arith.constant 0 : index
    %10 = vector.load %arg5[%c0_9, %c0_10] : memref<1x1xf32, #tpu.memory_space<vmem>>, vector<1x1xf32>
    %11 = vector.broadcast %10 : vector<1x1xf32> to vector<128x1xf32>
    %12 = arith.addf %9, %11 : vector<128x1xf32>
    %13 = arith.negf %12 : vector<128x1xf32>
    %14 = math.exp %13 : vector<128x1xf32>
    %cst_11 = arith.constant 1.000000e+00 : f32
    %15 = vector.broadcast %cst_11 : f32 to vector<128x1xf32>
    %16 = arith.addf %15, %14 : vector<128x1xf32>
    %17 = arith.divf %15, %16 : vector<128x1xf32>
    %c0_12 = arith.constant 0 : index
    %c0_13 = arith.constant 0 : index
    %18 = vector.load %arg6[%c0_12, %c0_13] : memref<128x1xf32, #tpu.memory_space<vmem>>, vector<128x1xf32>
    tpu.vector_store %arg6[%c0_12, %c0_13], %17 {strides = array<i32>} : memref<128x1xf32, #tpu.memory_space<vmem>>, vector<128x1xf32>,
    return
  }
  func.func @transform_0(%arg0: i32) -> (i32, i32) {
    %c0_i32 = arith.constant 0 : i32
    %c0_i32_0 = arith.constant 0 : i32
    return %arg0, %c0_i32 : i32, i32
  }
  func.func @transform_1(%arg0: i32) -> (i32, i32) {
    %c0_i32 = arith.constant 0 : i32
    %c0_i32_0 = arith.constant 0 : i32
    %c0_i32_1 = arith.constant 0 : i32
    return %c0_i32, %c0_i32_0 : i32, i32
  }
  func.func @transform_2(%arg0: i32) -> (i32, i32) {
    %c0_i32 = arith.constant 0 : i32
    %c0_i32_0 = arith.constant 0 : i32
    %c0_i32_1 = arith.constant 0 : i32
    return %c0_i32, %c0_i32_0 : i32, i32
  }
  func.func @transform_3(%arg0: i32) -> (i32, i32) {
    %c0_i32 = arith.constant 0 : i32
    %c0_i32_0 = arith.constant 0 : i32
    %c0_i32_1 = arith.constant 0 : i32
    return %c0_i32, %c0_i32_0 : i32, i32
  }
  func.func @transform_4(%arg0: i32) -> (i32, i32) {
    %c0_i32 = arith.constant 0 : i32
    %c0_i32_0 = arith.constant 0 : i32
    %c0_i32_1 = arith.constant 0 : i32
    return %c0_i32, %c0_i32_0 : i32, i32
  }
  func.func @transform_5(%arg0: i32) -> (i32, i32) {
    %c0_i32 = arith.constant 0 : i32
    %c0_i32_0 = arith.constant 0 : i32
    return %arg0, %c0_i32 : i32, i32
  }
}

</mosaic_0001>

<bundles_post_ra>
// kernel: tpu_custom_call.1
= control target key start
LH: loop header
LB: loop body
LE: loop exit
PB: predicated region body
PF: predicated region fallthrough
CT: control target
= control target key end

     0   :  { %s990_s0 = inlined_call_operand.vmem [shape: f32[16,32], index: 0, kind: input, shape index: {}]   ;;  %s991_s1 = inlined_call_operand.vmem [shape: f32[32,16], index: 1, kind: input, shape index: {}]   ;;  %s992_s2 = inlined_call_operand.vmem [shape: f32[1,16], index: 2, kind: input, shape index: {}]   ;;  %s993_s3 = inlined_call_operand.vmem [shape: f32[16,1], index: 3, kind: input, shape index: {}]   ;;  %s994_s4 = inlined_call_operand.<no memory space> [shape: f32[1,1], index: 4, kind: input, shape index: {}]   ;;  %s995_s5 = inlined_call_operand.vmem [shape: f32[16,1], index: 5, kind: output, shape index: {}]  }
   0x1   :  { %v10_v0 = vstv %s994_s4 }
   0x2   :  { %11 = vst [vmem:[#allocation2] sm:$0x1] %v10_v0 }
   0x3   :  { %v41_v1 = vld [vmem:[%s991_s1 + $0x18] sm:$0xff]  ;;  %v40_v2 = vld [vmem:[%s991_s1 + $0x10] sm:$0xff]  ;;  %vm49_vm0 = vcmask 261120   ;;  %v22_v3 = vld [vmem:[%s990_s0] sm:$0xff]  ;;  %vm268_vm1 = vcmask 130048   ;;  %vm558_vm2 = vcmask 7168  }
   0x4   :  { %708 = vmatprep.subr.mxu0 %v41_v1  ;;  %v39_v4 = vld [vmem:[%s991_s1 + $0x8] sm:$0xff]  ;;  %716 = vmatprep.mubr.msk.f32.mxu0 %vm49_vm0, %v22_v3  ;;  %v38_v5 = vld [vmem:[%s991_s1] sm:$0xff]  ;;  %v24_v7 = vld [vmem:[%s990_s0 + $0x10] sm:$0xff] }
   0x5   :  { %709 = vmatpush3.msra.mxu0 %v41_v1  ;;  %v23_v6 = vld [vmem:[%s990_s0 + $0x8] sm:$0xff]  ;;  %v25_v8 = vld [vmem:[%s990_s0 + $0x18] sm:$0xff]  ;;  %v26_v9 = vld [vmem:[%s990_s0 + $0x20] sm:$0xff] }
   0x6   :  { %710 = vmatprep.subr.mxu0 %v40_v2  ;;  %v27_v10 = vld [vmem:[%s990_s0 + $0x28] sm:$0xff]  ;;  %v28_v11 = vld [vmem:[%s990_s0 + $0x30] sm:$0xff]  ;;  %v29_v12 = vld [vmem:[%s990_s0 + $0x38] sm:$0xff] }
   0x7   :  { %711 = vmatpush3.msra.mxu0 %v40_v2  ;;  %v30_v13 = vld [vmem:[%s990_s0 + $0x40] sm:$0xff]  ;;  %v31_v14 = vld [vmem:[%s990_s0 + $0x48] sm:$0xff]  ;;  %v32_v15 = vld [vmem:[%s990_s0 + $0x50] sm:$0xff] }
   0x8   :  { %712 = vmatprep.subr.mxu0 %v39_v4  ;;  %v33_v16 = vld [vmem:[%s990_s0 + $0x58] sm:$0xff]  ;;  %v34_v17 = vld [vmem:[%s990_s0 + $0x60] sm:$0xff]  ;;  %v35_v18 = vld [vmem:[%s990_s0 + $0x68] sm:$0xff] }
   0x9   :  { %713 = vmatpush3.msra.mxu0 %v39_v4  ;;  %v36_v19 = vld [vmem:[%s990_s0 + $0x70] sm:$0xff]  ;;  %v37_v20 = vld [vmem:[%s990_s0 + $0x78] sm:$0xff]  ;;  %v260_v21 = vld [vmem:[%s993_s3 + $0x8] sm:$0xff] }
   0xa   :  { %714 = vmatprep.subr.mxu0 %v38_v5  ;;  %740 = vmatprep.subr.mxu1 %v260_v21  ;;  %v259_v22 = vld [vmem:[%s993_s3] sm:$0xff] }
   0xb   :  { %715 = vmatpush3.msra.mxu0 %v38_v5  ;;  %741 = vmatpush3.msra.mxu1 %v260_v21  ;;  %v620_v23 = vld [vmem:[%s992_s2] ss:$0 sm:$0xff] }
   0xc   :  { %717 = vmatmul.mubr.msk.f32.vlgmr.msra.gmra.mxu0 %vm49_vm0, %v23_v6  ;;  %742 = vmatprep.subr.mxu1 %v259_v22 }
   0xd   :  { %719 = vmatprep.mubr.msk.f32.mxu0 %vm49_vm0, %v24_v7  ;;  %743 = vmatpush3.msra.mxu1 %v259_v22 }
  0x10   :  { %720 = vmatmul.mubr.msk.f32.gmra.mxu0 %vm49_vm0, %v25_v8  ;;  %v966_v8 = vld [vmem:[#allocation2] ss:$0 sm:$0xff] }
  0x11   :  { %722 = vmatprep.mubr.msk.f32.mxu0 %vm49_vm0, %v26_v9 }
  0x14   :  { %723 = vmatmul.mubr.msk.f32.gmra.mxu0 %vm49_vm0, %v27_v10 }
  0x15   :  { %725 = vmatprep.mubr.msk.f32.mxu0 %vm49_vm0, %v28_v11 }
  0x18   :  { %726 = vmatmul.mubr.msk.f32.gmra.mxu0 %vm49_vm0, %v29_v12 }
  0x19   :  { %728 = vmatprep.mubr.msk.f32.mxu0 %vm49_vm0, %v30_v13 }
  0x1c   :  { %729 = vmatmul.mubr.msk.f32.gmra.mxu0 %vm49_vm0, %v31_v14 }
  0x1d   :  { %731 = vmatprep.mubr.msk.f32.mxu0 %vm49_vm0, %v32_v15 }
  0x20   :  { %732 = vmatmul.mubr.msk.f32.gmra.mxu0 %vm49_vm0, %v33_v16 }
  0x21   :  { %734 = vmatprep.mubr.msk.f32.mxu0 %vm49_vm0, %v34_v17 }
  0x24   :  { %735 = vmatmul.mubr.msk.f32.gmra.mxu0 %vm49_vm0, %v35_v18 }
  0x25   :  { %737 = vmatprep.mubr.msk.f32.mxu0 %vm49_vm0, %v36_v19 }
  0x28   :  { %738 = vmatmul.mubr.msk.f32.gmra.mxu0 %vm49_vm0, %v37_v20 }
  0xcc   :  { %v718_v24 = vpop.f32.mrf.mxu0 }
  0xcd   :  { %v170_v25 = vadd.f32 %v718_v24, %v620_v23 }
  0xce   :  { %v164_v26 = vpop.f32.mrf.mxu0 }
  0xcf   :  { %v165_v27 = vadd.f32 %v620_v23, %v164_v26  ;;  %v244_v30 = vmax.f32 %v170_v25, 0.0 }
  0xd0   :  { %v721_v28 = vpop.f32.mrf.mxu0 }
  0xd1   :  { %v243_v29 = vmax.f32 %v165_v27, 0.0  ;;  %v180_v31 = vadd.f32 %v721_v28, %v620_v23 }
  0xd2   :  { %v174_v32 = vpop.f32.mrf.mxu0 }
  0xd3   :  { %v175_v33 = vadd.f32 %v620_v23, %v174_v32  ;;  %744 = vmatprep.mubr.msk.f32.mxu1 %vm268_vm1, %v243_v29  ;;  %v246_v36 = vmax.f32 %v180_v31, 0.0 }
  0xd4   :  { %v724_v34 = vpop.f32.mrf.mxu0  ;;  %745 = vmatmul.mubr.msk.f32.vlgmr.msra.gmra.mxu1 %vm268_vm1, %v244_v30 }
  0xd5   :  { %v245_v35 = vmax.f32 %v175_v33, 0.0  ;;  %v190_v37 = vadd.f32 %v724_v34, %v620_v23 }
  0xd6   :  { %v184_v38 = vpop.f32.mrf.mxu0 }
  0xd7   :  { %v185_v39 = vadd.f32 %v620_v23, %v184_v38  ;;  %747 = vmatprep.mubr.msk.f32.mxu1 %vm268_vm1, %v245_v35  ;;  %v248_v42 = vmax.f32 %v190_v37, 0.0 }
  0xd8   :  { %v727_v40 = vpop.f32.mrf.mxu0  ;;  %748 = vmatmul.mubr.msk.f32.gmra.mxu1 %vm268_vm1, %v246_v36 }
  0xd9   :  { %v247_v41 = vmax.f32 %v185_v39, 0.0  ;;  %v200_v43 = vadd.f32 %v727_v40, %v620_v23 }
  0xda   :  { %v194_v44 = vpop.f32.mrf.mxu0 }
  0xdb   :  { %v195_v45 = vadd.f32 %v620_v23, %v194_v44  ;;  %750 = vmatprep.mubr.msk.f32.mxu1 %vm268_vm1, %v247_v41  ;;  %v250_v48 = vmax.f32 %v200_v43, 0.0 }
  0xdc   :  { %v730_v46 = vpop.f32.mrf.mxu0  ;;  %751 = vmatmul.mubr.msk.f32.gmra.mxu1 %vm268_vm1, %v248_v42 }
  0xdd   :  { %v249_v47 = vmax.f32 %v195_v45, 0.0  ;;  %v210_v49 = vadd.f32 %v730_v46, %v620_v23 }
  0xde   :  { %v204_v50 = vpop.f32.mrf.mxu0 }
  0xdf   :  { %v205_v51 = vadd.f32 %v620_v23, %v204_v50  ;;  %753 = vmatprep.mubr.msk.f32.mxu1 %vm268_vm1, %v249_v47  ;;  %v252_v54 = vmax.f32 %v210_v49, 0.0 }
  0xe0   :  { %v733_v52 = vpop.f32.mrf.mxu0  ;;  %754 = vmatmul.mubr.msk.f32.gmra.mxu1 %vm268_vm1, %v250_v48 }
  0xe1   :  { %v251_v53 = vmax.f32 %v205_v51, 0.0  ;;  %v220_v55 = vadd.f32 %v733_v52, %v620_v23 }
  0xe2   :  { %v214_v56 = vpop.f32.mrf.mxu0 }
  0xe3   :  { %v215_v57 = vadd.f32 %v620_v23, %v214_v56  ;;  %756 = vmatprep.mubr.msk.f32.mxu1 %vm268_vm1, %v251_v53  ;;  %v254_v60 = vmax.f32 %v220_v55, 0.0 }
  0xe4   :  { %v736_v58 = vpop.f32.mrf.mxu0  ;;  %757 = vmatmul.mubr.msk.f32.gmra.mxu1 %vm268_vm1, %v252_v54 }
  0xe5   :  { %v253_v59 = vmax.f32 %v215_v57, 0.0  ;;  %v230_v61 = vadd.f32 %v736_v58, %v620_v23 }
  0xe6   :  { %v224_v62 = vpop.f32.mrf.mxu0 }
  0xe7   :  { %v225_v63 = vadd.f32 %v620_v23, %v224_v62  ;;  %759 = vmatprep.mubr.msk.f32.mxu1 %vm268_vm1, %v253_v59  ;;  %v256_v2 = vmax.f32 %v230_v61, 0.0 }
  0xe8   :  { %v739_v0 = vpop.f32.mrf.mxu0  ;;  %760 = vmatmul.mubr.msk.f32.gmra.mxu1 %vm268_vm1, %v254_v60 }
  0xe9   :  { %v255_v1 = vmax.f32 %v225_v63, 0.0  ;;  %v240_v3 = vadd.f32 %v739_v0, %v620_v23 }
  0xea   :  { %v234_v4 = vpop.f32.mrf.mxu0 }
  0xeb   :  { %v235_v5 = vadd.f32 %v620_v23, %v234_v4  ;;  %762 = vmatprep.mubr.msk.f32.mxu1 %vm268_vm1, %v255_v1  ;;  %v258_v7 = vmax.f32 %v240_v3, 0.0 }
  0xec   :  { %763 = vmatmul.mubr.msk.f32.gmra.mxu1 %vm268_vm1, %v256_v2 }
  0xed   :  { %v257_v6 = vmax.f32 %v235_v5, 0.0 }
  0xef   :  { %765 = vmatprep.mubr.msk.f32.mxu1 %vm268_vm1, %v257_v6 }
  0xf0   :  { %766 = vmatmul.mubr.msk.f32.gmra.mxu1 %vm268_vm1, %v258_v7 }
 0x194   :  { %v746_v9 = vpop.f32.mrf.mxu1 }
 0x195   :  { %v389_v10 = vadd.f32 %v746_v9, %v966_v8 }
 0x196   :  { %v383_v11 = vpop.f32.mrf.mxu1 }
 0x197   :  { %v655_v12 = vmul.f32 -1.442695, %v389_v10  ;;  %v384_v13 = vadd.f32 %v966_v8, %v383_v11 }
 0x198   :  { %v749_v14 = vpop.f32.mrf.mxu1 }
 0x199   :  { %768 = vpow2.f32 %v655_v12  ;;  %v654_v15 = vmul.f32 -1.442695, %v384_v13  ;;  %v399_v16 = vadd.f32 %v749_v14, %v966_v8 }
 0x19a   :  { %v393_v17 = vpop.f32.mrf.mxu1 }
 0x19b   :  { %770 = vpow2.f32 %v654_v15  ;;  %v657_v18 = vmul.f32 -1.442695, %v399_v16  ;;  %v394_v19 = vadd.f32 %v966_v8, %v393_v17 }
 0x19c   :  { %v752_v20 = vpop.f32.mrf.mxu1 }
 0x19d   :  { %772 = vpow2.f32 %v657_v18  ;;  %v656_v21 = vmul.f32 -1.442695, %v394_v19  ;;  %v409_v22 = vadd.f32 %v752_v20, %v966_v8 }
 0x19e   :  { %v403_v23 = vpop.f32.mrf.mxu1 }
 0x19f   :  { %774 = vpow2.f32 %v656_v21  ;;  %v659_v24 = vmul.f32 -1.442695, %v409_v22  ;;  %v404_v25 = vadd.f32 %v966_v8, %v403_v23 }
 0x1a0   :  { %v755_v26 = vpop.f32.mrf.mxu1 }
 0x1a1   :  { %776 = vpow2.f32 %v659_v24  ;;  %v658_v27 = vmul.f32 -1.442695, %v404_v25  ;;  %v419_v28 = vadd.f32 %v755_v26, %v966_v8 }
 0x1a2   :  { %v413_v29 = vpop.f32.mrf.mxu1 }
 0x1a3   :  { %778 = vpow2.f32 %v658_v27  ;;  %v661_v30 = vmul.f32 -1.442695, %v419_v28  ;;  %v414_v31 = vadd.f32 %v966_v8, %v413_v29 }
 0x1a4   :  { %v758_v32 = vpop.f32.mrf.mxu1 }
 0x1a5   :  { %780 = vpow2.f32 %v661_v30  ;;  %v660_v33 = vmul.f32 -1.442695, %v414_v31  ;;  %v429_v34 = vadd.f32 %v758_v32, %v966_v8 }
 0x1a6   :  { %v769_v35 = vpop.eup %768  ;;  %v423_v36 = vpop.f32.mrf.mxu1 }
 0x1a7   :  { %v511_v37 = vadd.f32 1.0, %v769_v35  ;;  %782 = vpow2.f32 %v660_v33  ;;  %v663_v38 = vmul.f32 -1.442695, %v429_v34  ;;  %v424_v39 = vadd.f32 %v966_v8, %v423_v36 }
 0x1a8   :  { %v771_v40 = vpop.eup %770  ;;  %v761_v41 = vpop.f32.mrf.mxu1 }
 0x1a9   :  { %784 = vrcp.f32 %v511_v37  ;;  %v510_v42 = vadd.f32 1.0, %v771_v40  ;;  %v662_v43 = vmul.f32 -1.442695, %v424_v39  ;;  %v439_v44 = vadd.f32 %v761_v41, %v966_v8 }
 0x1aa   :  { %v773_v45 = vpop.eup %772  ;;  %786 = vpow2.f32 %v663_v38  ;;  %v433_v46 = vpop.f32.mrf.mxu1 }
 0x1ab   :  { %788 = vrcp.f32 %v510_v42  ;;  %v513_v47 = vadd.f32 1.0, %v773_v45  ;;  %v665_v48 = vmul.f32 -1.442695, %v439_v44  ;;  %v434_v49 = vadd.f32 %v966_v8, %v433_v46 }
 0x1ac   :  { %v775_v50 = vpop.eup %774  ;;  %790 = vpow2.f32 %v662_v43  ;;  %v764_v51 = vpop.f32.mrf.mxu1 }
 0x1ad   :  { %792 = vrcp.f32 %v513_v47  ;;  %v512_v52 = vadd.f32 1.0, %v775_v50  ;;  %v664_v53 = vmul.f32 -1.442695, %v434_v49  ;;  %v449_v54 = vadd.f32 %v764_v51, %v966_v8 }
 0x1ae   :  { %v777_v55 = vpop.eup %776  ;;  %794 = vpow2.f32 %v665_v48  ;;  %v443_v56 = vpop.f32.mrf.mxu1 }
 0x1af   :  { %796 = vrcp.f32 %v512_v52  ;;  %v515_v57 = vadd.f32 1.0, %v777_v55  ;;  %v667_v58 = vmul.f32 -1.442695, %v449_v54  ;;  %v444_v59 = vadd.f32 %v966_v8, %v443_v56 }
 0x1b0   :  { %v779_v60 = vpop.eup %778  ;;  %798 = vpow2.f32 %v664_v53  ;;  %v767_v61 = vpop.f32.mrf.mxu1 }
 0x1b1   :  { %800 = vrcp.f32 %v515_v57  ;;  %v514_v62 = vadd.f32 1.0, %v779_v60  ;;  %v666_v63 = vmul.f32 -1.442695, %v444_v59  ;;  %v459_v0 = vadd.f32 %v767_v61, %v966_v8 }
 0x1b2   :  { %v781_v1 = vpop.eup %780  ;;  %802 = vpow2.f32 %v667_v58  ;;  %v453_v2 = vpop.f32.mrf.mxu1 }
 0x1b3   :  { %804 = vrcp.f32 %v514_v62  ;;  %v517_v3 = vadd.f32 1.0, %v781_v1  ;;  %v669_v4 = vmul.f32 -1.442695, %v459_v0  ;;  %v454_v5 = vadd.f32 %v966_v8, %v453_v2 }
 0x1b4   :  { %v783_v6 = vpop.eup %782  ;;  %806 = vpow2.f32 %v666_v63 }
 0x1b5   :  { %808 = vrcp.f32 %v517_v3  ;;  %v516_v7 = vadd.f32 1.0, %v783_v6  ;;  %v668_v9 = vmul.f32 -1.442695, %v454_v5 }
 0x1b6   :  { %v785_v10 = vpop.eup %784  ;;  %810 = vpow2.f32 %v669_v4 }
 0x1b7   :  { %v787_v11 = vpop.eup %786  ;;  %560 = vst.msk [vmem:[#allocation3 + $0x8] sm:$0xff] %vm558_vm2, %v785_v10  ;;  %812 = vrcp.f32 %v516_v7 }
 0x1b8   :  { %v789_v12 = vpop.eup %788  ;;  %v519_v13 = vadd.f32 1.0, %v787_v11  ;;  %814 = vpow2.f32 %v668_v9 }
 0x1b9   :  { %v791_v14 = vpop.eup %790  ;;  %559 = vst.msk [vmem:[#allocation3] sm:$0xff] %vm558_vm2, %v789_v12 }
 0x1ba   :  { %v793_v15 = vpop.eup %792  ;;  %816 = vrcp.f32 %v519_v13  ;;  %v518_v16 = vadd.f32 1.0, %v791_v14 }
 0x1bb   :  { %v795_v8 = vpop.eup %794 }
 0x1bc   :  { %v797_v17 = vpop.eup %796  ;;  %818 = vrcp.f32 %v518_v16  ;;  %v521_v18 = vadd.f32 1.0, %v795_v8 }
 0x1bd   :  { %v799_v19 = vpop.eup %798 }
 0x1be   :  { %v801_v20 = vpop.eup %800  ;;  %v609_v21 = vld [vmem:[#allocation3 + $0x8] sm:$0xff]  ;;  %820 = vrcp.f32 %v521_v18  ;;  %v520_v22 = vadd.f32 1.0, %v799_v19 }
 0x1bf   :  { %v803_v23 = vpop.eup %802  ;;  %610 = vst [vmem:[%s995_s5 + $0x8] sm:$0xff] %v609_v21 }
 0x1c0   :  { %v805_v24 = vpop.eup %804  ;;  %v607_v25 = vld [vmem:[#allocation3] sm:$0xff]  ;;  %822 = vrcp.f32 %v520_v22  ;;  %v523_v26 = vadd.f32 1.0, %v803_v23 }
 0x1c1   :  { %v807_v27 = vpop.eup %806  ;;  %608 = vst [vmem:[%s995_s5] sm:$0xff] %v607_v25 }
 0x1c2   :  { %v809_v28 = vpop.eup %808  ;;  %824 = vrcp.f32 %v523_v26  ;;  %v522_v29 = vadd.f32 1.0, %v807_v27 }
 0x1c3   :  { %v811_v30 = vpop.eup %810 }
 0x1c4   :  { %v813_v31 = vpop.eup %812  ;;  %826 = vrcp.f32 %v522_v29  ;;  %v525_v32 = vadd.f32 1.0, %v811_v30 }
 0x1c5   :  { %v815_v33 = vpop.eup %814 }
 0x1c6   :  { %828 = vrcp.f32 %v525_v32  ;;  %v524_v34 = vadd.f32 1.0, %v815_v33 }
 0x1c7   :  { %v817_v35 = vpop.eup %816 }
 0x1c8   :  { %830 = vrcp.f32 %v524_v34 }
 0x1c9   :  { %v819_v36 = vpop.eup %818 }
 0x1cb   :  { %v821_v37 = vpop.eup %820 }
 0x1cd   :  { %v823_v38 = vpop.eup %822 }
 0x1cf   :  { %v825_v39 = vpop.eup %824 }
 0x1d1   :  { %v827_v40 = vpop.eup %826 }
 0x1d3   :  { %v829_v41 = vpop.eup %828 }
 0x1d5   :  { %v831_v42 = vpop.eup %830 }

</bundles_post_ra>
